<compile_context>
chip_gen: v6e
topology: v6e:2x2x1
jax: 0.10.0
libtpu: 0.0.40
codegen_flags: <defaults>
</compile_context>

<pallas_src>
import functools

import jax
import jax.numpy as jnp
from jax.experimental import pallas as pl
from jax.experimental.pallas import tpu as pltpu


def _silu(x):
    return x * jax.nn.sigmoid(x)


def gctu_kernel(x_ref, wuv_ref, buv_ref, t_ref, wo_ref, bo_ref, out_ref, *,
                nb, seq_len, num_heads, head_dim, d1):
    """One grid step = `nb` batch elements flattened to nb*seq_len rows."""
    rows = nb * seq_len
    out_dim = out_ref.shape[-1]

    # Fused u/v projection: a single MXU matmul with M = nb*N rows and a
    # lane-dense 2*d1-wide result.  bf16 operands, f32 accumulation.
    uv = jnp.dot(x_ref[...], wuv_ref[...],
                 preferred_element_type=jnp.float32)            # (rows, 2*d1) f32
    uv = _silu(uv + buv_ref[...])
    v_bf = uv[:, d1:].astype(jnp.bfloat16)                      # value branch -> MXU dtype

    # Accumulate the output projection head-by-head; this removes the
    # lane-shuffling concatenate of per-head Toeplitz results entirely.
    y = jnp.zeros((rows, out_dim), jnp.float32)
    for h in range(num_heads):                                  # static, small loop
        lo = h * head_dim
        hi = lo + head_dim
        t_h = t_ref[h]                                          # (N, N) bf16
        # Toeplitz mixing over the sequence axis, one small matmul per batch
        # element in this block.  All slices are static; no relayouts.
        # (Widening the RHS across B would need a sublane->lane transpose of v,
        #  which costs more than it saves at B=2; revisit for large B.)
        o_parts = [
            jnp.dot(t_h, v_bf[b * seq_len:(b + 1) * seq_len, lo:hi],
                    preferred_element_type=jnp.float32)
            for b in range(nb)
        ]
        o_h = o_parts[0] if nb == 1 else jnp.concatenate(o_parts, axis=0)
        g_h = (uv[:, lo:hi] * o_h).astype(jnp.bfloat16)         # gate (f32 math)
        y = y + jnp.dot(g_h, wo_ref[lo:hi, :],
                        preferred_element_type=jnp.float32)
    out_ref[...] = (y + bo_ref[...]).astype(out_ref.dtype)


def make_toeplitz_matrix(coef, decay, seq_len, causal=False):
    """Build per-head (N, N) Toeplitz mixing matrices from k coefficients.

    coef:  (H, k) learned coefficients
    decay: (H,)   per-head decay in (0, 1)
    """
    H, k = coef.shape
    r = jnp.arange(-(seq_len - 1), seq_len, dtype=jnp.float32)          # (2N-1,)
    j = jnp.arange(k, dtype=jnp.float32)
    basis = jnp.cos(jnp.pi * jnp.outer(j, r) / seq_len)                 # (k, 2N-1)
    t = coef @ basis                                                    # (H, 2N-1)
    # NOTE: decay**|r| underflows for very long sequences; move to log-space then.
    t = t * (decay[:, None] ** jnp.abs(r)[None, :])
    if causal:
        t = jnp.where(r[None, :] >= 0.0, t, 0.0)
    idx = (jnp.arange(seq_len)[:, None] - jnp.arange(seq_len)[None, :]
           + (seq_len - 1))                                             # (N, N)
    return t[:, idx]                                                    # (H, N, N)


def gctu_forward(x, packed_params, num_heads, *, batch_block=None):
    """x: (B, N, E) f32.  packed_params = (Wuv[E,2d1] bf16, buv[1,2d1] f32,
    Wo[d1,E] bf16, bo[1,E] f32, T[H,N,N] bf16)."""
    wuv, buv, wo, bo, T = packed_params
    B, N, E = x.shape
    d1 = wo.shape[0]
    head_dim = d1 // num_heads

    # Batch elements per grid step: fold B into the matmul M dimension so the
    # MXU sees >=128 rows per step, while capping rows per step so larger
    # problems still get multiple "parallel" grid steps (v7x megacore).
    if batch_block is None:
        batch_block = max(1, 128 // N) if N < 128 else 1
        batch_block = min(batch_block, max(1, 512 // max(N, 1)), B)
        while B % batch_block:
            batch_block -= 1
    nb = batch_block
    steps = B // nb
    rows = nb * N

    x_flat = x.reshape(B * N, E).astype(jnp.bfloat16)

    kernel = functools.partial(
        gctu_kernel, nb=nb, seq_len=N, num_heads=num_heads,
        head_dim=head_dim, d1=d1)

    # TODO(synk): for long sequences the (H, N, N) Toeplitz tensor is O(H*N^2)
    # and should be tiled over a row-block grid axis (or generated in-kernel
    # from the Ctno coefficients) instead of DMA'd whole; at small N it fits
    # VMEM comfortably (bf16, ~24 KiB here).
    out_flat = pl.pallas_call(
        kernel,
        out_shape=jax.ShapeDtypeStruct((B * N, E), x.dtype),
        grid=(steps,),
        in_specs=[
            pl.BlockSpec((rows, E), lambda i: (i, 0)),             # x row block
            pl.BlockSpec((E, 2 * d1), lambda i: (0, 0)),           # fused Wu|Wv
            pl.BlockSpec((1, 2 * d1), lambda i: (0, 0)),           # fused bu|bv
            pl.BlockSpec((num_heads, N, N), lambda i: (0, 0, 0)),  # Toeplitz T
            pl.BlockSpec((d1, E), lambda i: (0, 0)),               # Wo
            pl.BlockSpec((1, E), lambda i: (0, 0)),                # bo
        ],
        out_specs=pl.BlockSpec((rows, E), lambda i: (i, 0)),
        compiler_params=pltpu.CompilerParams(
            dimension_semantics=("parallel",)),
    )(x_flat, wuv, buv, T, wo, bo)
    return out_flat.reshape(B, N, E)


def gctu_reference(x, params, num_heads):
    """Pure-JAX reference of the same math (for correctness check)."""
    wu, bu, wv, bv, wo, bo, T = params
    B, N, E = x.shape
    d1 = wu.shape[1]
    hd = d1 // num_heads
    u = _silu(x @ wu + bu)                                    # (B, N, d1)
    v = _silu(x @ wv + bv)                                    # (B, N, d1)
    v = v.reshape(B, N, num_heads, hd).transpose(0, 2, 1, 3)  # (B, H, N, hd)
    o = jnp.einsum('hij,bhjd->bhid', T, v)                    # Toeplitz mixing
    o = o.transpose(0, 2, 1, 3).reshape(B, N, d1)             # (B, N, d1)
    return (u * o) @ wo + bo


def init_linear(key, fan_in, fan_out):
    """nn.Linear default init (uniform +-1/sqrt(fan_in)), deterministic."""
    kw, kb = jax.random.split(key)
    bound = 1.0 / (fan_in ** 0.5)
    w = jax.random.uniform(kw, (fan_in, fan_out), jnp.float32, -bound, bound)
    b = jax.random.uniform(kb, (1, fan_out), jnp.float32, -bound, bound)
    return w, b


if __name__ == "__main__":
    # Module hyper-parameters (small, consistent with Gctu.__init__):
    embed_dim = 32
    num_heads = 3
    expand_ratio = 3
    k = 128
    causal = False
    d1 = (expand_ratio * embed_dim) // num_heads * num_heads   # 96

    # Data shapes
    B, N = 2, 64

    key = jax.random.PRNGKey(0)
    kx, ku, kv, ko, kc = jax.random.split(key, 5)

    x = jax.random.normal(kx, (B, N, embed_dim), dtype=jnp.float32)

    wu, bu = init_linear(ku, embed_dim, d1)     # u_proj
    wv, bv = init_linear(kv, embed_dim, d1)     # v_proj
    wo, bo = init_linear(ko, d1, embed_dim)     # o

    # Ctno parameters: k coefficients per head + per-head decay (deterministic)
    coef = jax.random.normal(kc, (num_heads, k), dtype=jnp.float32) / k
    decay = jnp.linspace(0.85, 0.99, num_heads, dtype=jnp.float32)
    T = make_toeplitz_matrix(coef, decay, N, causal=causal)    # (H, N, N)

    # Pack + cast once on the host side: MXU operands in bf16, biases in f32.
    wuv = jnp.concatenate([wu, wv], axis=1).astype(jnp.bfloat16)   # (E, 2*d1)
    buv = jnp.concatenate([bu, bv], axis=1)                        # (1, 2*d1) f32
    wo_bf = wo.astype(jnp.bfloat16)
    T_bf = T.astype(jnp.bfloat16)
    packed = (wuv, buv, wo_bf, bo, T_bf)

    out = gctu_forward(x, packed, num_heads)
    out = jax.block_until_ready(out)

    # Reference in f32 math using the same bf16-rounded operands the kernel
    # consumes (bf16 MXU inputs -> slightly looser tolerance).
    f32 = lambda a: a.astype(jnp.float32)
    ref = gctu_reference(
        f32(x.astype(jnp.bfloat16)),
        (f32(wuv[:, :d1]), buv[:, :d1], f32(wuv[:, d1:]), buv[:, d1:],
         f32(wo_bf), bo, f32(T_bf)),
        num_heads)

    assert out.shape == (B, N, embed_dim)
    assert jnp.allclose(out, ref, atol=3e-2, rtol=3e-2), "mismatch vs reference"

    print("KERNEL_OK")
</pallas_src>

<mosaic_0001>
module attributes {stable_mosaic.version = 11 : i64} {
  func.func @gctu_kernel(%arg0: i32, %arg1: memref<128x32xbf16, #tpu.memory_space<vmem>>, %arg2: memref<32x192xbf16, #tpu.memory_space<vmem>>, %arg3: memref<1x192xf32, #tpu.memory_space<vmem>>, %arg4: memref<3x64x64xbf16, #tpu.memory_space<vmem>>, %arg5: memref<96x32xbf16, #tpu.memory_space<vmem>>, %arg6: memref<1x32xf32, #tpu.memory_space<vmem>>, %arg7: memref<128x32xf32, #tpu.memory_space<vmem>>) attributes {dimension_semantics = [#tpu.dimension_semantics<parallel>], iteration_bounds = array<i64: 1>, scalar_prefetch = 0 : i64, scratch_operands = 0 : i64, tpu.core_type = #tpu.core_type<tc>, window_params = [{transform_indices = @transform_0, window_bounds = array<i64: 128, 32>}, {pipeline_mode = #tpu.pipeline_mode<synchronous>, transform_indices = @transform_1, window_bounds = array<i64: 32, 192>}, {pipeline_mode = #tpu.pipeline_mode<synchronous>, transform_indices = @transform_2, window_bounds = array<i64: 1, 192>}, {pipeline_mode = #tpu.pipeline_mode<synchronous>, transform_indices = @transform_3, window_bounds = array<i64: 3, 64, 64>}, {pipeline_mode = #tpu.pipeline_mode<synchronous>, transform_indices = @transform_4, window_bounds = array<i64: 96, 32>}, {pipeline_mode = #tpu.pipeline_mode<synchronous>, transform_indices = @transform_5, window_bounds = array<i64: 1, 32>}, {transform_indices = @transform_6, window_bounds = array<i64: 128, 32>}]} {
    %c0 = arith.constant 0 : index
    %c0_0 = arith.constant 0 : index
    %0 = vector.load %arg1[%c0, %c0_0] : memref<128x32xbf16, #tpu.memory_space<vmem>>, vector<128x32xbf16>
    %c0_1 = arith.constant 0 : index
    %c0_2 = arith.constant 0 : index
    %1 = vector.load %arg2[%c0_1, %c0_2] : memref<32x192xbf16, #tpu.memory_space<vmem>>, vector<32x192xbf16>
    %cst = arith.constant dense<0.000000e+00> : vector<128x192xf32>
    %2 = tpu.matmul %0, %1, %cst {dimension_numbers = #tpu.dot_dimension_numbers<[1], [0], [0], [1], [0, 0, 1, 1], [], []>} : vector<128x32xbf16>, vector<32x192xbf16>, vector<128x192xf32> -> vector<128x192xf32>
    %c0_3 = arith.constant 0 : index
    %c0_4 = arith.constant 0 : index
    %3 = vector.load %arg3[%c0_3, %c0_4] : memref<1x192xf32, #tpu.memory_space<vmem>>, vector<1x192xf32>
    %4 = vector.broadcast %3 : vector<1x192xf32> to vector<128x192xf32>
    %5 = arith.addf %2, %4 : vector<128x192xf32>
    %6 = arith.negf %5 : vector<128x192xf32>
    %7 = math.exp %6 : vector<128x192xf32>
    %cst_5 = arith.constant 1.000000e+00 : f32
    %8 = vector.broadcast %cst_5 : f32 to vector<128x192xf32>
    %9 = arith.addf %8, %7 : vector<128x192xf32>
    %10 = arith.divf %8, %9 : vector<128x192xf32>
    %11 = arith.mulf %5, %10 : vector<128x192xf32>
    %12 = vector.extract_strided_slice %11 {offsets = [0, 96], sizes = [128, 96], strides = [1, 1]} : vector<128x192xf32> to vector<128x96xf32>
    %13 = arith.truncf %12 : vector<128x96xf32> to vector<128x96xbf16>
    %cst_6 = arith.constant 0.000000e+00 : f32
    %14 = vector.broadcast %cst_6 : f32 to vector<128x32xf32>
    %c0_7 = arith.constant 0 : index
    %c0_8 = arith.constant 0 : index
    %c0_9 = arith.constant 0 : index
    %15 = vector.load %arg4[%c0_7, %c0_8, %c0_9] : memref<3x64x64xbf16, #tpu.memory_space<vmem>>, vector<1x64x64xbf16>
    %16 = vector.shape_cast %15 : vector<1x64x64xbf16> to vector<64x64xbf16>
    %17 = vector.extract_strided_slice %13 {offsets = [0, 0], sizes = [64, 32], strides = [1, 1]} : vector<128x96xbf16> to vector<64x32xbf16>
    %cst_10 = arith.constant dense<0.000000e+00> : vector<64x32xf32>
    %18 = tpu.matmul %16, %17, %cst_10 {dimension_numbers = #tpu.dot_dimension_numbers<[1], [0], [0], [1], [0, 0, 1, 1], [], []>} : vector<64x64xbf16>, vector<64x32xbf16>, vector<64x32xf32> -> vector<64x32xf32>
    %19 = vector.extract_strided_slice %13 {offsets = [64, 0], sizes = [64, 32], strides = [1, 1]} : vector<128x96xbf16> to vector<64x32xbf16>
    %cst_11 = arith.constant dense<0.000000e+00> : vector<64x32xf32>
    %20 = tpu.matmul %16, %19, %cst_11 {dimension_numbers = #tpu.dot_dimension_numbers<[1], [0], [0], [1], [0, 0, 1, 1], [], []>} : vector<64x64xbf16>, vector<64x32xbf16>, vector<64x32xf32> -> vector<64x32xf32>
    %21 = tpu.concatenate %18, %20 in 0 : vector<64x32xf32>, vector<64x32xf32> -> vector<128x32xf32>
    %22 = vector.extract_strided_slice %11 {offsets = [0, 0], sizes = [128, 32], strides = [1, 1]} : vector<128x192xf32> to vector<128x32xf32>
    %23 = arith.mulf %22, %21 : vector<128x32xf32>
    %24 = arith.truncf %23 : vector<128x32xf32> to vector<128x32xbf16>
    %c0_12 = arith.constant 0 : index
    %c0_13 = arith.constant 0 : index
    %25 = vector.load %arg5[%c0_12, %c0_13] : memref<96x32xbf16, #tpu.memory_space<vmem>>, vector<32x32xbf16>
    %cst_14 = arith.constant dense<0.000000e+00> : vector<128x32xf32>
    %26 = tpu.matmul %24, %25, %cst_14 {dimension_numbers = #tpu.dot_dimension_numbers<[1], [0], [0], [1], [0, 0, 1, 1], [], []>} : vector<128x32xbf16>, vector<32x32xbf16>, vector<128x32xf32> -> vector<128x32xf32>
    %27 = arith.addf %14, %26 : vector<128x32xf32>
    %c1 = arith.constant 1 : index
    %c0_15 = arith.constant 0 : index
    %c0_16 = arith.constant 0 : index
    %28 = vector.load %arg4[%c1, %c0_15, %c0_16] : memref<3x64x64xbf16, #tpu.memory_space<vmem>>, vector<1x64x64xbf16>
    %29 = vector.shape_cast %28 : vector<1x64x64xbf16> to vector<64x64xbf16>
    %30 = vector.extract_strided_slice %13 {offsets = [0, 32], sizes = [64, 32], strides = [1, 1]} : vector<128x96xbf16> to vector<64x32xbf16>
    %cst_17 = arith.constant dense<0.000000e+00> : vector<64x32xf32>
    %31 = tpu.matmul %29, %30, %cst_17 {dimension_numbers = #tpu.dot_dimension_numbers<[1], [0], [0], [1], [0, 0, 1, 1], [], []>} : vector<64x64xbf16>, vector<64x32xbf16>, vector<64x32xf32> -> vector<64x32xf32>
    %32 = vector.extract_strided_slice %13 {offsets = [64, 32], sizes = [64, 32], strides = [1, 1]} : vector<128x96xbf16> to vector<64x32xbf16>
    %cst_18 = arith.constant dense<0.000000e+00> : vector<64x32xf32>
    %33 = tpu.matmul %29, %32, %cst_18 {dimension_numbers = #tpu.dot_dimension_numbers<[1], [0], [0], [1], [0, 0, 1, 1], [], []>} : vector<64x64xbf16>, vector<64x32xbf16>, vector<64x32xf32> -> vector<64x32xf32>
    %34 = tpu.concatenate %31, %33 in 0 : vector<64x32xf32>, vector<64x32xf32> -> vector<128x32xf32>
    %35 = vector.extract_strided_slice %11 {offsets = [0, 32], sizes = [128, 32], strides = [1, 1]} : vector<128x192xf32> to vector<128x32xf32>
    %36 = arith.mulf %35, %34 : vector<128x32xf32>
    %37 = arith.truncf %36 : vector<128x32xf32> to vector<128x32xbf16>
    %c32 = arith.constant 32 : index
    %c0_19 = arith.constant 0 : index
    %38 = vector.load %arg5[%c32, %c0_19] : memref<96x32xbf16, #tpu.memory_space<vmem>>, vector<32x32xbf16>
    %cst_20 = arith.constant dense<0.000000e+00> : vector<128x32xf32>
    %39 = tpu.matmul %37, %38, %cst_20 {dimension_numbers = #tpu.dot_dimension_numbers<[1], [0], [0], [1], [0, 0, 1, 1], [], []>} : vector<128x32xbf16>, vector<32x32xbf16>, vector<128x32xf32> -> vector<128x32xf32>
    %40 = arith.addf %27, %39 : vector<128x32xf32>
    %c2 = arith.constant 2 : index
    %c0_21 = arith.constant 0 : index
    %c0_22 = arith.constant 0 : index
    %41 = vector.load %arg4[%c2, %c0_21, %c0_22] : memref<3x64x64xbf16, #tpu.memory_space<vmem>>, vector<1x64x64xbf16>
    %42 = vector.shape_cast %41 : vector<1x64x64xbf16> to vector<64x64xbf16>
    %43 = vector.extract_strided_slice %13 {offsets = [0, 64], sizes = [64, 32], strides = [1, 1]} : vector<128x96xbf16> to vector<64x32xbf16>
    %cst_23 = arith.constant dense<0.000000e+00> : vector<64x32xf32>
    %44 = tpu.matmul %42, %43, %cst_23 {dimension_numbers = #tpu.dot_dimension_numbers<[1], [0], [0], [1], [0, 0, 1, 1], [], []>} : vector<64x64xbf16>, vector<64x32xbf16>, vector<64x32xf32> -> vector<64x32xf32>
    %45 = vector.extract_strided_slice %13 {offsets = [64, 64], sizes = [64, 32], strides = [1, 1]} : vector<128x96xbf16> to vector<64x32xbf16>
    %cst_24 = arith.constant dense<0.000000e+00> : vector<64x32xf32>
    %46 = tpu.matmul %42, %45, %cst_24 {dimension_numbers = #tpu.dot_dimension_numbers<[1], [0], [0], [1], [0, 0, 1, 1], [], []>} : vector<64x64xbf16>, vector<64x32xbf16>, vector<64x32xf32> -> vector<64x32xf32>
    %47 = tpu.concatenate %44, %46 in 0 : vector<64x32xf32>, vector<64x32xf32> -> vector<128x32xf32>
    %48 = vector.extract_strided_slice %11 {offsets = [0, 64], sizes = [128, 32], strides = [1, 1]} : vector<128x192xf32> to vector<128x32xf32>
    %49 = arith.mulf %48, %47 : vector<128x32xf32>
    %50 = arith.truncf %49 : vector<128x32xf32> to vector<128x32xbf16>
    %c64 = arith.constant 64 : index
    %c0_25 = arith.constant 0 : index
    %51 = vector.load %arg5[%c64, %c0_25] : memref<96x32xbf16, #tpu.memory_space<vmem>>, vector<32x32xbf16>
    %cst_26 = arith.constant dense<0.000000e+00> : vector<128x32xf32>
    %52 = tpu.matmul %50, %51, %cst_26 {dimension_numbers = #tpu.dot_dimension_numbers<[1], [0], [0], [1], [0, 0, 1, 1], [], []>} : vector<128x32xbf16>, vector<32x32xbf16>, vector<128x32xf32> -> vector<128x32xf32>
    %53 = arith.addf %40, %52 : vector<128x32xf32>
    %c0_27 = arith.constant 0 : index
    %c0_28 = arith.constant 0 : index
    %54 = vector.load %arg6[%c0_27, %c0_28] : memref<1x32xf32, #tpu.memory_space<vmem>>, vector<1x32xf32>
    %55 = vector.broadcast %54 : vector<1x32xf32> to vector<128x32xf32>
    %56 = arith.addf %53, %55 : vector<128x32xf32>
    %c0_29 = arith.constant 0 : index
    %c0_30 = arith.constant 0 : index
    %57 = vector.load %arg7[%c0_29, %c0_30] : memref<128x32xf32, #tpu.memory_space<vmem>>, vector<128x32xf32>
    tpu.vector_store %arg7[%c0_29, %c0_30], %56 {strides = array<i32>} : memref<128x32xf32, #tpu.memory_space<vmem>>, vector<128x32xf32>,
    return
  }
  func.func @transform_0(%arg0: i32) -> (i32, i32) {
    %c0_i32 = arith.constant 0 : i32
    %c0_i32_0 = arith.constant 0 : i32
    return %arg0, %c0_i32 : i32, i32
  }
  func.func @transform_1(%arg0: i32) -> (i32, i32) {
    %c0_i32 = arith.constant 0 : i32
    %c0_i32_0 = arith.constant 0 : i32
    %c0_i32_1 = arith.constant 0 : i32
    return %c0_i32, %c0_i32_0 : i32, i32
  }
  func.func @transform_2(%arg0: i32) -> (i32, i32) {
    %c0_i32 = arith.constant 0 : i32
    %c0_i32_0 = arith.constant 0 : i32
    %c0_i32_1 = arith.constant 0 : i32
    return %c0_i32, %c0_i32_0 : i32, i32
  }
  func.func @transform_3(%arg0: i32) -> (i32, i32, i32) {
    %c0_i32 = arith.constant 0 : i32
    %c0_i32_0 = arith.constant 0 : i32
    %c0_i32_1 = arith.constant 0 : i32
    %c0_i32_2 = arith.constant 0 : i32
    return %c0_i32, %c0_i32_0, %c0_i32_1 : i32, i32, i32
  }
  func.func @transform_4(%arg0: i32) -> (i32, i32) {
    %c0_i32 = arith.constant 0 : i32
    %c0_i32_0 = arith.constant 0 : i32
    %c0_i32_1 = arith.constant 0 : i32
    return %c0_i32, %c0_i32_0 : i32, i32
  }
  func.func @transform_5(%arg0: i32) -> (i32, i32) {
    %c0_i32 = arith.constant 0 : i32
    %c0_i32_0 = arith.constant 0 : i32
    %c0_i32_1 = arith.constant 0 : i32
    return %c0_i32, %c0_i32_0 : i32, i32
  }
  func.func @transform_6(%arg0: i32) -> (i32, i32) {
    %c0_i32 = arith.constant 0 : i32
    %c0_i32_0 = arith.constant 0 : i32
    return %arg0, %c0_i32 : i32, i32
  }
}

</mosaic_0001>

<bundles_post_ra>
// kernel: tpu_custom_call.1
= control target key start
LH: loop header
LB: loop body
LE: loop exit
PB: predicated region body
PF: predicated region fallthrough
CT: control target
= control target key end

     0   :  { %v2326_v1 = vmov 0   ;;  %vm116_vm0 = vcmask 261120   ;;  %v46_v13 = vlaneseq  ;;  %vm538_vm1 = vcmask 523264   ;;  %s2328_s20 = smov 96   ;;  %s3065_s1 = inlined_call_operand.vmem [shape: bf16[32,192], index: 1, kind: input, shape index: {}]   ;;  %s3066_s0 = inlined_call_operand.vmem [shape: bf16[128,32], index: 0, kind: input, shape index: {}]   ;;  %s3067_s2 = inlined_call_operand.vmem [shape: f32[1,192], index: 2, kind: input, shape index: {}]   ;;  %s3068_s3 = inlined_call_operand.vmem [shape: bf16[3,64,64], index: 3, kind: input, shape index: {}]   ;;  %s3069_s4 = inlined_call_operand.vmem [shape: bf16[96,32], index: 4, kind: input, shape index: {}]   ;;  %s3070_s5 = inlined_call_operand.vmem [shape: f32[1,32], index: 5, kind: input, shape index: {}]   ;;  %s3071_s6 = inlined_call_operand.vmem [shape: f32[128,32], index: 6, kind: output, shape index: {}]  }
   0x1   :  { %v2166_v0 = vld [vmem:[%s3065_s1 + $0x14] ss:$8 sps:$4 sm:$0xff]   ;;  %173 = vmatprep.mubr.bf16.mxu0 %v2326_v1  ;;  %233 = vmatprep.mubr.bf16.mxu1 %v2326_v1  ;;  %v2168_v2 = vld [vmem:[%s3065_s1 + $0x10] ss:$8 sps:$4 sm:$0xff]   ;;  %v2169_v3 = vld [vmem:[%s3065_s1 + $0x4] ss:$8 sps:$4 sm:$0xff]  }
   0x2   :  { %153 = vmatprep.subr.bf16.mxu0 %v2166_v0  ;;  %2158 = vmatprep.subr.bf16.mxu1 %v2166_v0  ;;  %v2171_v4 = vld [vmem:[%s3065_s1] ss:$8 sps:$4 sm:$0xff]   ;;  %v2173_v6 = vld [vmem:[%s3066_s0 + $0x30] sm:$0xff]   ;;  %v2175_v8 = vld [vmem:[%s3066_s0 + $0x38] sm:$0xff]   ;;  %v47_v14 = vshrl.u32 %v46_v13, 7 }
   0x3   :  { %154 = vmatpush1.bf16.msra.mxu0 %v2168_v2  ;;  %2160 = vmatpush1.bf16.msra.mxu1 %v2168_v2  ;;  %v2172_v5 = vld [vmem:[%s3066_s0] sm:$0xff]   ;;  %v2174_v7 = vld [vmem:[%s3066_s0 + $0x8] sm:$0xff]   ;;  %v2176_v9 = vld [vmem:[%s3066_s0 + $0x10] sm:$0xff]  }
   0x4   :  { %155 = vmatprep.subr.bf16.mxu0 %v2169_v3  ;;  %2159 = vmatprep.subr.bf16.mxu1 %v2169_v3  ;;  %v2177_v10 = vld [vmem:[%s3066_s0 + $0x18] sm:$0xff]   ;;  %v2178_v11 = vld [vmem:[%s3066_s0 + $0x20] sm:$0xff]   ;;  %v2179_v12 = vld [vmem:[%s3066_s0 + $0x28] sm:$0xff]   ;;  %v48_v15 = vsub.s32 0, %v47_v14  ;;  %v52_v17 = vsub.s32 1, %v47_v14  ;;  %s2327_s0 = smov 32  }
   0x5   :  { %v44_v16 = vld [vmem:[%s3067_s2] sm:$0x3] }
   0x6   :  { %v2412_v18 = vrot.slane %v44_v16, %v48_v15  ;;  %v2414_v19 = vrot.slane %v44_v16, %v52_v17 }
   0x7   :  { %156 = vmatpush1.bf16.msra.mxu0 %v2171_v4  ;;  %2161 = vmatpush1.bf16.msra.mxu1 %v2171_v4 }
   0xa   :  { %1801 = vmatmul.mubr.msk.bf16.vlgmr.msra.gmra.mxu0 %vm116_vm0, %v2172_v5  ;;  %1807 = vmatmul.mubr.msk.bf16.vlgmr.msra.gmra.mxu1 %vm116_vm0, %v2173_v6 }
   0xb   :  { %183 = vmatprep.mubr.bf16.mxu0 %v2326_v1  ;;  %243 = vmatprep.mubr.bf16.mxu1 %v2326_v1 }
  0x12   :  { %1802 = vmatmul.mubr.msk.bf16.gmra.mxu0 %vm116_vm0, %v2174_v7  ;;  %1808 = vmatmul.mubr.msk.bf16.gmra.mxu1 %vm116_vm0, %v2175_v8 }
  0x13   :  { %193 = vmatprep.mubr.bf16.mxu0 %v2326_v1 }
  0x1a   :  { %1803 = vmatmul.mubr.msk.bf16.gmra.mxu0 %vm116_vm0, %v2176_v9 }
  0x1b   :  { %203 = vmatprep.mubr.bf16.mxu0 %v2326_v1 }
  0x22   :  { %1804 = vmatmul.mubr.msk.bf16.gmra.mxu0 %vm116_vm0, %v2177_v10 }
  0x23   :  { %213 = vmatprep.mubr.bf16.mxu0 %v2326_v1 }
  0x2a   :  { %1805 = vmatmul.mubr.msk.bf16.gmra.mxu0 %vm116_vm0, %v2178_v11 }
  0x2b   :  { %223 = vmatprep.mubr.bf16.mxu0 %v2326_v1 }
  0x32   :  { %1806 = vmatmul.mubr.msk.bf16.gmra.mxu0 %vm116_vm0, %v2179_v12 }
  0xca   :  { %v175_v20 = vpop.f32.mrf.mxu0  ;;  %v235_v21 = vpop.f32.mrf.mxu1 }
  0xcb   :  { %v2417_v22 = vadd.f32 %v175_v20, %v2412_v18  ;;  %v2432_v33 = vadd.f32 %v235_v21, %v2412_v18 }
  0xcc   :  { %v177_v23 = vpop.f32.mrf.mxu0  ;;  %v237_v24 = vpop.f32.mrf.mxu1 }
  0xcd   :  { %v2420_v25 = vadd.f32 %v177_v23, %v2414_v19  ;;  %v2423_v26 = vadd.f32 %v237_v24, %v2414_v19  ;;  %v1809_v29 = vmul.f32 -1.442695, %v2417_v22  ;;  %v1833_v45 = vmul.f32 -1.442695, %v2432_v33 }
  0xce   :  { %v179_v27 = vpop.f32.mrf.mxu0  ;;  %v239_v28 = vpop.f32.mrf.mxu1 }
  0xcf   :  { %v1810_v30 = vmul.f32 -1.442695, %v2420_v25  ;;  %v1834_v31 = vmul.f32 -1.442695, %v2423_v26  ;;  %v2429_v32 = vadd.f32 %v179_v27, %v2412_v18  ;;  %v2442_v39 = vadd.f32 %v239_v28, %v2412_v18 }
  0xd0   :  { %v181_v34 = vpop.f32.mrf.mxu0  ;;  %v241_v35 = vpop.f32.mrf.mxu1 }
  0xd1   :  { %2198 = vpow2.f32 %v1810_v30  ;;  %v1811_v36 = vmul.f32 -1.442695, %v2429_v32  ;;  %v2436_v37 = vadd.f32 %v181_v34, %v2414_v19  ;;  %v2439_v38 = vadd.f32 %v241_v35, %v2414_v19 }
  0xd2   :  { %2200 = vpow2.f32 %v1834_v31  ;;  %v185_v40 = vpop.f32.mrf.mxu0  ;;  %v245_v41 = vpop.f32.mrf.mxu1  ;;  %v1835_v50 = vmul.f32 -1.442695, %v2442_v39 }
  0xd3   :  { %2202 = vpow2.f32 %v1809_v29  ;;  %v1812_v42 = vmul.f32 -1.442695, %v2436_v37  ;;  %v1836_v43 = vmul.f32 -1.442695, %v2439_v38  ;;  %v2447_v44 = vadd.f32 %v185_v40, %v2412_v18 }
  0xd4   :  { %2204 = vpow2.f32 %v1811_v36  ;;  %v187_v46 = vpop.f32.mrf.mxu0  ;;  %v2450_v47 = vpop.f32.mrf.mxu1  ;;  %v2462_v56 = vadd.f32 %v245_v41, %v2412_v18 }
  0xd5   :  { %2206 = vpow2.f32 %v1812_v42  ;;  %v1813_v48 = vmul.f32 -1.442695, %v2447_v44  ;;  %v2454_v49 = vadd.f32 %v187_v46, %v2414_v19 }
  0xd6   :  { %2208 = vpow2.f32 %v1836_v43  ;;  %v189_v51 = vpop.f32.mrf.mxu0  ;;  %v249_v54 = vpop.f32.mrf.mxu1  ;;  %v1837_v63 = vmul.f32 -1.442695, %v2462_v56 }
  0xd7   :  { %2210 = vpow2.f32 %v1813_v48  ;;  %v1814_v52 = vmul.f32 -1.442695, %v2454_v49  ;;  %v2459_v53 = vadd.f32 %v189_v51, %v2412_v18  ;;  %v2469_v59 = vadd.f32 %v249_v54, %v2412_v18 }
  0xd8   :  { %2212 = vpow2.f32 %v1833_v45  ;;  %v191_v55 = vpop.f32.mrf.mxu0 }
  0xd9   :  { %2214 = vpow2.f32 %v1814_v52  ;;  %v1815_v57 = vmul.f32 -1.442695, %v2459_v53  ;;  %v2466_v58 = vadd.f32 %v191_v55, %v2414_v19  ;;  %v1839_v1 = vmul.f32 -1.442695, %v2469_v59 }
  0xda   :  { %2216 = vpow2.f32 %v1835_v50  ;;  %v195_v60 = vpop.f32.mrf.mxu0 }
  0xdb   :  { %2218 = vpow2.f32 %v1815_v57  ;;  %v1816_v61 = vmul.f32 -1.442695, %v2466_v58  ;;  %v2475_v29 = vadd.f32 %v195_v60, %v2412_v18 }
  0xdc   :  { %v197_v62 = vpop.f32.mrf.mxu0 }
  0xdd   :  { %2220 = vpow2.f32 %v1816_v61  ;;  %v2478_v34 = vadd.f32 %v197_v62, %v2414_v19  ;;  %v1817_v48 = vmul.f32 -1.442695, %v2475_v29 }
  0xde   :  { %v2199_v0 = vpop.eup %2198  ;;  %v199_v2 = vpop.f32.mrf.mxu0  ;;  %2222 = vpow2.f32 %v1837_v63 }
  0xdf   :  { %v2201_v3 = vpop.eup %2200  ;;  %v351_v4 = vadd.f32 1.0, %v2199_v0  ;;  %2224 = vpow2.f32 %v1839_v1  ;;  %v2481_v40 = vadd.f32 %v199_v2, %v2412_v18  ;;  %v1818_v51 = vmul.f32 -1.442695, %v2478_v34 }
  0xe0   :  { %v2203_v5 = vpop.eup %2202  ;;  %v375_v6 = vadd.f32 1.0, %v2201_v3  ;;  %v201_v7 = vpop.f32.mrf.mxu0 }
  0xe1   :  { %v2205_v8 = vpop.eup %2204  ;;  %v350_v12 = vadd.f32 1.0, %v2203_v5  ;;  %2226 = vrcp.f32 %v351_v4  ;;  %v2484_v43 = vadd.f32 %v201_v7, %v2414_v19  ;;  %v1819_v55 = vmul.f32 -1.442695, %v2481_v40 }
  0xe2   :  { %v2207_v9 = vpop.eup %2206  ;;  %v205_v10 = vpop.f32.mrf.mxu0  ;;  %2228 = vrcp.f32 %v375_v6  ;;  %v352_v15 = vadd.f32 1.0, %v2205_v8 }
  0xe3   :  { %v2209_v11 = vpop.eup %2208  ;;  %v353_v13 = vadd.f32 1.0, %v2207_v9  ;;  %v2488_v50 = vadd.f32 %v205_v10, %v2412_v18  ;;  %v1820_v61 = vmul.f32 -1.442695, %v2484_v43 }
  0xe4   :  { %v2211_v14 = vpop.eup %2210  ;;  %v377_v16 = vadd.f32 1.0, %v2209_v11  ;;  %v207_v17 = vpop.f32.mrf.mxu0 }
  0xe5   :  { %v2213_v20 = vpop.eup %2212  ;;  %2230 = vrcp.f32 %v353_v13  ;;  %v354_v21 = vadd.f32 1.0, %v2211_v14  ;;  %v2492_v52 = vadd.f32 %v207_v17, %v2414_v19  ;;  %v1821_v2 = vmul.f32 -1.442695, %v2488_v50 }
  0xe6   :  { %v2215_v23 = vpop.eup %2214  ;;  %2232 = vrcp.f32 %v377_v16  ;;  %v209_v24 = vpop.f32.mrf.mxu0  ;;  %v374_v31 = vadd.f32 1.0, %v2213_v20 }
  0xe7   :  { %v2217_v27 = vpop.eup %2216  ;;  %2234 = vrcp.f32 %v350_v12  ;;  %v355_v28 = vadd.f32 1.0, %v2215_v23  ;;  %v2496_v57 = vadd.f32 %v209_v24, %v2412_v18  ;;  %v1822_v4 = vmul.f32 -1.442695, %v2492_v52 }
  0xe8   :  { %v2219_v30 = vpop.eup %2218  ;;  %2236 = vrcp.f32 %v352_v15  ;;  %v211_v35 = vpop.f32.mrf.mxu0  ;;  %v376_v42 = vadd.f32 1.0, %v2217_v27 }
  0xe9   :  { %2238 = vrcp.f32 %v354_v21  ;;  %v356_v36 = vadd.f32 1.0, %v2219_v30  ;;  %v2502_v62 = vadd.f32 %v211_v35, %v2414_v19  ;;  %v1823_v8 = vmul.f32 -1.442695, %v2496_v57 }
  0xea   :  { %v2221_v41 = vpop.eup %2220  ;;  %2240 = vrcp.f32 %v355_v28  ;;  %v215_v45 = vpop.f32.mrf.mxu0 }
  0xeb   :  { %2242 = vrcp.f32 %v356_v36  ;;  %v357_v46 = vadd.f32 1.0, %v2221_v41  ;;  %v2498_v60 = vpop.eup %2222  ;;  %v2505_v63 = vadd.f32 %v215_v45, %v2412_v18  ;;  %v1824_v11 = vmul.f32 -1.442695, %v2502_v62 }
  0xec   :  { %2244 = vrcp.f32 %v374_v31  ;;  %v217_v54 = vpop.f32.mrf.mxu0  ;;  %v2225_v1 = vpop.eup %2224 }
  0xed   :  { %2246 = vrcp.f32 %v357_v46  ;;  %v2510_v5 = vadd.f32 %v217_v54, %v2414_v19  ;;  %v1825_v12 = vmul.f32 -1.442695, %v2505_v63 }
  0xee   :  { %2248 = vrcp.f32 %v376_v42  ;;  %v219_v0 = vpop.f32.mrf.mxu0  ;;  %v2227_v3 = vpop.eup %2226 }
  0xef   :  { %2250 = vpow2.f32 %v1817_v48  ;;  %v2229_v7 = vpop.eup %2228  ;;  %v2514_v9 = vadd.f32 %v219_v0, %v2412_v18  ;;  %v447_v16 = vmul.f32 %v2227_v3, %v2420_v25  ;;  %v1826_v27 = vmul.f32 -1.442695, %v2510_v5 }
  0xf0   :  { %2252 = vpow2.f32 %v1818_v51  ;;  %v221_v6 = vpop.f32.mrf.mxu0  ;;  %v471_v23 = vmul.f32 %v2229_v7, %v2423_v26  ;;  %v380_v0 = vadd.f32 1.0, %v2225_v1 }
  0xf1   :  { %2254 = vpow2.f32 %v1819_v55  ;;  %v2519_v13 = vadd.f32 %v221_v6, %v2414_v19  ;;  %v1827_v25 = vmul.f32 -1.442695, %v2514_v9 }
  0xf2   :  { %v2231_v10 = vpop.eup %2230  ;;  %2256 = vpow2.f32 %v1820_v61  ;;  %v225_v14 = vpop.f32.mrf.mxu0 }
  0xf3   :  { %v2233_v15 = vpop.eup %2232  ;;  %v449_v17 = vmul.f32 %v2231_v10, %v2436_v37  ;;  %2258 = vpow2.f32 %v1821_v2  ;;  %v2524_v20 = vadd.f32 %v225_v14, %v2412_v18  ;;  %v1828_v37 = vmul.f32 -1.442695, %v2519_v13 }
  0xf4   :  { %v2235_v21 = vpop.eup %2234  ;;  %v473_v24 = vmul.f32 %v2233_v15, %v2439_v38  ;;  %2260 = vpow2.f32 %v1822_v4  ;;  %v2529_v28 = vpop.f32.mrf.mxu0 }
  0xf5   :  { %v2237_v30 = vpop.eup %2236  ;;  %2262 = vpow2.f32 %v1823_v8  ;;  %v2533_v36 = vpack.c.bf16 %v449_v17, %v447_v16  ;;  %v1829_v38 = vmul.f32 -1.442695, %v2524_v20  ;;  %v2556_v6 = vmul.f32 %v2235_v21, %v2417_v22 }
  0xf6   :  { %v2239_v31 = vpop.eup %2238  ;;  %2264 = vpow2.f32 %v1824_v11  ;;  %v229_v35 = vpop.f32.mrf.mxu0  ;;  %v2535_v41 = vpack.c.bf16 %v473_v24, %v471_v23  ;;  %v2549_v61 = vmul.f32 %v2237_v30, %v2429_v32 }
  0xf7   :  { %v2241_v26 = vpop.eup %2240  ;;  %2266 = vpow2.f32 %v1825_v12  ;;  %v2539_v42 = vadd.f32 %v229_v35, %v2412_v18  ;;  %v2542_v48 = vmul.f32 %v2239_v31, %v2447_v44 }
  0xf8   :  { %v2243_v45 = vpop.eup %2242  ;;  %2268 = vpow2.f32 %v1826_v27  ;;  %v451_v2 = vmul.f32 %v2241_v26, %v2454_v49  ;;  %v478_v22 = vpack.c.bf16 %v2549_v61, %v2556_v6  ;;  %v378_v26 = vadd.f32 1.0, %v2498_v60 }
  0xf9   :  { %v2245_v46 = vpop.eup %2244  ;;  %v2545_v51 = vmul.f32 %v2243_v45, %v2459_v53  ;;  %2270 = vpow2.f32 %v1827_v25  ;;  %v1831_v54 = vmul.f32 -1.442695, %v2539_v42 }
  0xfa   :  { %v2247_v55 = vpop.eup %2246  ;;  %2272 = vpow2.f32 %v1828_v37  ;;  %v2567_v15 = vmul.f32 %v2245_v46, %v2432_v33 }
  0xfb   :  { %v2249_v18 = vpop.eup %2248  ;;  %v453_v3 = vmul.f32 %v2247_v55, %v2466_v58  ;;  %2274 = vpow2.f32 %v1829_v38  ;;  %v480_v44 = vpack.c.bf16 %v2545_v51, %v2542_v48 }
  0xfc   :  { %v2251_v53 = vpop.eup %2250  ;;  %2276 = vpow2.f32 %v1831_v54  ;;  %v2562_v8 = vmul.f32 %v2249_v18, %v2442_v39 }
  0xfd   :  { %v2253_v4 = vpop.eup %2252  ;;  %v358_v7 = vadd.f32 1.0, %v2251_v53  ;;  %528 = vrot.lane.b32.xlu1 %v480_v44, %s2327_s0  ;;  %v2559_v32 = vpack.c.bf16 %v453_v3, %v451_v2  ;;  %2278 = vrcp.f32 %v380_v0 }
  0xfe   :  { %v2255_v1 = vpop.eup %2254  ;;  %v359_v49 = vadd.f32 1.0, %v2253_v4  ;;  %v490_v24 = vpack.c.bf16 %v2562_v8, %v2567_v15 }
  0xff   :  { %v2257_v58 = vpop.eup %2256  ;;  %2280 = vrcp.f32 %v358_v7  ;;  %v360_v10 = vadd.f32 1.0, %v2255_v1 }
 0x100   :  { %v2259_v11 = vpop.eup %2258  ;;  %2282 = vrcp.f32 %v359_v49  ;;  %v361_v12 = vadd.f32 1.0, %v2257_v58 }
 0x101   :  { %v2261_v14 = vpop.eup %2260  ;;  %2284 = vrcp.f32 %v360_v10  ;;  %v362_v16 = vadd.f32 1.0, %v2259_v11  ;;  %526 = vrot.lane.b32.xlu1 %v478_v22, %s2327_s0 }
 0x102   :  { %v2263_v17 = vpop.eup %2262  ;;  %2286 = vrcp.f32 %v361_v12  ;;  %v363_v39 = vadd.f32 1.0, %v2261_v14 }
 0x103   :  { %v2265_v21 = vpop.eup %2264  ;;  %2288 = vrcp.f32 %v362_v16  ;;  %v364_v23 = vadd.f32 1.0, %v2263_v17 }
 0x104   :  { %v2267_v27 = vpop.eup %2266  ;;  %2290 = vrcp.f32 %v363_v39  ;;  %v365_v30 = vadd.f32 1.0, %v2265_v21 }
 0x105   :  { %v2269_v25 = vpop.eup %2268  ;;  %2292 = vrcp.f32 %v364_v23  ;;  %v366_v33 = vadd.f32 1.0, %v2267_v27  ;;  %624 = vrot.lane.b32.xlu1 %v490_v24, %s2327_s0 }
 0x106   :  { %v2271_v31 = vpop.eup %2270  ;;  %2294 = vrcp.f32 %v365_v30  ;;  %v367_v37 = vadd.f32 1.0, %v2269_v25 }
 0x107   :  { %v2273_v35 = vpop.eup %2272  ;;  %2296 = vrcp.f32 %v366_v33  ;;  %v368_v38 = vadd.f32 1.0, %v2271_v31 }
 0x108   :  { %v2275_v45 = vpop.eup %2274  ;;  %2298 = vrcp.f32 %v367_v37  ;;  %v369_v46 = vadd.f32 1.0, %v2273_v35  ;;  %v2640_v35 = vadd.f32 %v2450_v47, %v2414_v19  ;;  %v2649_v47 = vadd.f32 %v2529_v28, %v2414_v19 }
 0x109   :  { %2300 = vrcp.f32 %v368_v38  ;;  %v370_v54 = vadd.f32 1.0, %v2275_v45  ;;  %v2277_v55 = vpop.eup %2276  ;;  %v231_v38 = vpop.f32.mrf.mxu0 }
 0x10a   :  { %2302 = vrcp.f32 %v369_v46  ;;  %v2279_v0 = vpop.eup %2278  ;;  %v372_v18 = vadd.f32 1.0, %v2277_v55  ;;  %v1838_v45 = vmul.f32 -1.442695, %v2640_v35  ;;  %v2645_v55 = vadd.f32 %v231_v38, %v2414_v19 }
 0x10b   :  { %2304 = vrcp.f32 %v378_v26  ;;  %v2606_v30 = vmul.f32 %v2279_v0, %v2469_v59 }
 0x10c   :  { %v2281_v2 = vpop.eup %2280  ;;  %2306 = vrcp.f32 %v370_v54  ;;  %v1832_v0 = vmul.f32 -1.442695, %v2645_v55 }
 0x10d   :  { %v2283_v3 = vpop.eup %2282  ;;  %2308 = vrcp.f32 %v372_v18  ;;  %v2594_v23 = vmul.f32 %v2281_v2, %v2475_v29  ;;  %v1830_v2 = vmul.f32 -1.442695, %v2649_v47 }
 0x10e   :  { %v2285_v44 = vpop.eup %2284  ;;  %v455_v60 = vmul.f32 %v2283_v3, %v2478_v34  ;;  %v2181_v3 = vld [vmem:[%s3068_s3 + $0x8] sm:$0xff]  }
 0x10f   :  { %v2287_v53 = vpop.eup %2286  ;;  %v2587_v34 = vmul.f32 %v2285_v44, %v2481_v40 }
 0x110   :  { %v2289_v4 = vpop.eup %2288  ;;  %v457_v7 = vmul.f32 %v2287_v53, %v2484_v43 }
 0x111   :  { %v2291_v1 = vpop.eup %2290  ;;  %v2579_v22 = vmul.f32 %v2289_v4, %v2488_v50  ;;  %v482_v29 = vpack.c.bf16 %v2587_v34, %v2594_v23 }
 0x112   :  { %v2293_v49 = vpop.eup %2292  ;;  %v2576_v58 = vpack.c.bf16 %v457_v7, %v455_v60  ;;  %v459_v14 = vmul.f32 %v2291_v1, %v2492_v52  ;;  %v2183_v7 = vld [vmem:[%s3068_s3 + $0x18] sm:$0xff]  }
 0x113   :  { %v2295_v10 = vpop.eup %2294  ;;  %v2582_v11 = vmul.f32 %v2293_v49, %v2496_v57 }
 0x114   :  { %v2297_v12 = vpop.eup %2296  ;;  %v461_v16 = vmul.f32 %v2295_v10, %v2502_v62 }
 0x115   :  { %v2299_v17 = vpop.eup %2298  ;;  %v484_v43 = vpack.c.bf16 %v2582_v11, %v2579_v22  ;;  %v2597_v57 = vmul.f32 %v2297_v12, %v2505_v63 }
 0x116   :  { %v2301_v39 = vpop.eup %2300  ;;  %v2591_v21 = vpack.c.bf16 %v461_v16, %v459_v14  ;;  %v463_v62 = vmul.f32 %v2299_v17, %v2510_v5 }
 0x117   :  { %v2303_v50 = vpop.eup %2302  ;;  %v2600_v52 = vmul.f32 %v2301_v39, %v2514_v9  ;;  %532 = vrot.lane.b32.xlu0 %v484_v43, %s2327_s0  ;;  %v2180_v9 = vld [vmem:[%s3068_s3] sm:$0xff]  }
 0x118   :  { %v2305_v40 = vpop.eup %2304  ;;  %v465_v24 = vmul.f32 %v2303_v50, %v2519_v13  ;;  %2010 = vmatprep.mubr.msk.bf16.mxu1 %vm538_vm1, %v2180_v9  ;;  %v2184_v39 = vld [vmem:[%s3068_s3 + $0x20] sm:$0xff]  }
 0x119   :  { %v2307_v27 = vpop.eup %2306  ;;  %v486_v63 = vpack.c.bf16 %v2600_v52, %v2597_v57  ;;  %v2618_v5 = vmul.f32 %v2305_v40, %v2462_v56 }
 0x11a   :  { %v2309_v25 = vpop.eup %2308  ;;  %v2615_v33 = vpack.c.bf16 %v465_v24, %v463_v62  ;;  %v2627_v13 = vmul.f32 %v2307_v27, %v2524_v20  ;;  %v2185_v27 = vld [vmem:[%s3068_s3 + $0x28] sm:$0xff]  }
 0x11b   :  { %v2621_v59 = vmul.f32 %v2309_v25, %v2539_v42  ;;  %530 = vrot.lane.b32.xlu0 %v482_v29, %s2327_s0  ;;  %620 = vrot.lane.b32.xlu1 %v486_v63, %s2327_s0  ;;  %v492_v31 = vpack.c.bf16 %v2606_v30, %v2618_v5  ;;  %v251_v42 = vpop.f32.mrf.mxu1  ;;  %v2186_v63 = vld [vmem:[%s3068_s3 + $0x30] sm:$0xff]  }
 0x11c   :  { %v2636_v37 = vadd.f32 %v251_v42, %v2414_v19  ;;  %v2182_v19 = vld [vmem:[%s3068_s3 + $0x10] sm:$0xff]   ;;  %v2187_v42 = vld [vmem:[%s3068_s3 + $0x38] sm:$0xff]  }
 0x11d   :  { %v488_v56 = vpack.c.bf16 %v2621_v59, %v2627_v13 }
 0x11e   :  { %v1840_v26 = vmul.f32 -1.442695, %v2636_v37 }
 0x11f   :  { %626 = vrot.lane.b32.xlu0 %v492_v31, %s2327_s0 }
 0x120   :  { %2310 = vpow2.f32 %v1840_v26 }
 0x121   :  { %2312 = vpow2.f32 %v1838_v45 }
 0x122   :  { %2314 = vpow2.f32 %v1832_v0 }
 0x123   :  { %622 = vrot.lane.b32.xlu0 %v488_v56, %s2327_s0  ;;  %2316 = vpow2.f32 %v1830_v2 }
 0x12d   :  { %v2311_v28 = vpop.eup %2310 }
 0x12e   :  { %v2313_v4 = vpop.eup %2312  ;;  %v381_v60 = vadd.f32 1.0, %v2311_v28 }
 0x12f   :  { %v379_v49 = vadd.f32 1.0, %v2313_v4  ;;  %v2315_v10 = vpop.eup %2314 }
 0x130   :  { %2318 = vrcp.f32 %v381_v60  ;;  %v2317_v14 = vpop.eup %2316  ;;  %v373_v16 = vadd.f32 1.0, %v2315_v10 }
 0x131   :  { %2320 = vrcp.f32 %v379_v49  ;;  %v371_v17 = vadd.f32 1.0, %v2317_v14 }
 0x132   :  { %2322 = vrcp.f32 %v373_v16 }
 0x133   :  { %2324 = vrcp.f32 %v371_v17 }
 0x13d   :  { %v2319_v43 = vpop.eup %2318 }
 0x13e   :  { %v2321_v50 = vpop.eup %2320  ;;  %v477_v40 = vmul.f32 %v2319_v43, %v2636_v37  ;;  %v2188_v37 = vld [vmem:[%s3069_s4 + $0x8] sm:$0xff]  }
 0x13f   :  { %v475_v62 = vmul.f32 %v2321_v50, %v2640_v35  ;;  %v2323_v29 = vpop.eup %2322  ;;  %v2189_v35 = vld [vmem:[%s3069_s4] sm:$0xff]  }
 0x140   :  { %v469_v25 = vmul.f32 %v2323_v29, %v2645_v55 }
 0x141   :  { %v2682_v24 = vpack.c.bf16 %v477_v40, %v475_v62 }
 0x16f   :  { %v529_v46 = vpop.permute.xlu1 %528 }
 0x173   :  { %v527_v18 = vpop.permute.xlu1 %526 }
 0x177   :  { %v625_v53 = vpop.permute.xlu1 %624 }
 0x189   :  { %v533_v20 = vpop.permute.xlu0 %532 }
 0x18a   :  { %2002 = vmatprep.subr.bf16.mxu1 %v533_v20 }
 0x18b   :  { %2003 = vmatpush3.bf16.msra.mxu1 %v533_v20 }
 0x18d   :  { %v531_v54 = vpop.permute.xlu0 %530  ;;  %v621_v12 = vpop.permute.xlu1 %620 }
 0x18e   :  { %2004 = vmatprep.subr.bf16.mxu1 %v531_v54 }
 0x18f   :  { %2005 = vmatpush3.bf16.msra.mxu1 %v531_v54 }
 0x190   :  { %2006 = vmatprep.subr.bf16.mxu1 %v529_v46 }
 0x191   :  { %v627_v44 = vpop.permute.xlu0 %626 }
 0x193   :  { %2007 = vmatpush3.bf16.msra.mxu1 %v529_v46 }
 0x194   :  { %2008 = vmatprep.subr.bf16.mxu1 %v527_v18 }
 0x195   :  { %v623_v1 = vpop.permute.xlu0 %622 }
 0x197   :  { %2009 = vmatpush3.bf16.msra.mxu1 %v527_v18 }
 0x198   :  { %2018 = vmatprep.subr.bf16.mxu1 %v627_v44 }
 0x19a   :  { %2011 = vmatmul.mubr.msk.bf16.vlgmr.msra.gmra.mxu1 %vm538_vm1, %v2181_v3 }
 0x19b   :  { %2019 = vmatpush3.bf16.msra.mxu1 %v627_v44  ;;  %2014 = vmatprep.mubr.msk.bf16.mxu1 %vm538_vm1, %v2182_v19 }
 0x19c   :  { %2020 = vmatprep.subr.bf16.mxu1 %v625_v53 }
 0x19f   :  { %2021 = vmatpush3.bf16.msra.mxu1 %v625_v53 }
 0x1a0   :  { %2022 = vmatprep.subr.bf16.mxu1 %v623_v1 }
 0x1a2   :  { %2015 = vmatmul.mubr.msk.bf16.gmra.mxu1 %vm538_vm1, %v2183_v7 }
 0x1a3   :  { %2023 = vmatpush3.bf16.msra.mxu1 %v623_v1  ;;  %2026 = vmatprep.mubr.msk.bf16.mxu1 %vm538_vm1, %v2180_v9  ;;  %v2325_v9 = vpop.eup %2324 }
 0x1a4   :  { %2024 = vmatprep.subr.bf16.mxu1 %v621_v12  ;;  %v467_v31 = vmul.f32 %v2325_v9, %v2649_v47 }
 0x1a6   :  { %v2698_v56 = vpack.c.bf16 %v469_v25, %v467_v31 }
 0x1a7   :  { %2025 = vmatpush3.bf16.msra.mxu1 %v621_v12 }
 0x1a8   :  { %2034 = vmatprep.subr.bf16.mxu1 %v2591_v21 }
 0x1aa   :  { %2027 = vmatmul.mubr.msk.bf16.vlgmr.msra.gmra.mxu1 %vm538_vm1, %v2181_v3 }
 0x1ab   :  { %2035 = vmatpush3.bf16.msra.mxu1 %v2591_v21  ;;  %2030 = vmatprep.mubr.msk.bf16.mxu1 %vm538_vm1, %v2182_v19 }
 0x1ac   :  { %2036 = vmatprep.subr.bf16.mxu1 %v2576_v58 }
 0x1af   :  { %2037 = vmatpush3.bf16.msra.mxu1 %v2576_v58 }
 0x1b0   :  { %2038 = vmatprep.subr.bf16.mxu1 %v2559_v32 }
 0x1b2   :  { %2031 = vmatmul.mubr.msk.bf16.gmra.mxu1 %vm538_vm1, %v2183_v7 }
 0x1b3   :  { %2039 = vmatpush3.bf16.msra.mxu1 %v2559_v32  ;;  %2042 = vmatprep.mubr.msk.bf16.mxu1 %vm538_vm1, %v2184_v39 }
 0x1b4   :  { %2040 = vmatprep.subr.bf16.mxu1 %v2533_v36 }
 0x1b7   :  { %2041 = vmatpush3.bf16.msra.mxu1 %v2533_v36 }
 0x1b8   :  { %2050 = vmatprep.subr.bf16.mxu1 %v2682_v24 }
 0x1ba   :  { %2043 = vmatmul.mubr.msk.bf16.vlgmr.msra.gmra.mxu1 %vm538_vm1, %v2185_v27 }
 0x1bb   :  { %2051 = vmatpush3.bf16.msra.mxu1 %v2682_v24  ;;  %2046 = vmatprep.mubr.msk.bf16.mxu1 %vm538_vm1, %v2186_v63 }
 0x1bc   :  { %2052 = vmatprep.subr.bf16.mxu1 %v2535_v41 }
 0x1bf   :  { %2053 = vmatpush3.bf16.msra.mxu1 %v2535_v41 }
 0x1c0   :  { %2054 = vmatprep.subr.bf16.mxu1 %v2698_v56 }
 0x1c2   :  { %2047 = vmatmul.mubr.msk.bf16.gmra.mxu1 %vm538_vm1, %v2187_v42 }
 0x1c3   :  { %2055 = vmatpush3.bf16.msra.mxu1 %v2698_v56  ;;  %2058 = vmatprep.mubr.msk.bf16.mxu1 %vm538_vm1, %v2184_v39 }
 0x1c4   :  { %2056 = vmatprep.subr.bf16.mxu1 %v2615_v33 }
 0x1c7   :  { %2057 = vmatpush3.bf16.msra.mxu1 %v2615_v33 }
 0x1c8   :  { %2086 = vmatprep.subr.bf16.mxu1 %v2188_v37 }
 0x1ca   :  { %2059 = vmatmul.mubr.msk.bf16.vlgmr.msra.gmra.mxu1 %vm538_vm1, %v2185_v27 }
 0x1cb   :  { %2062 = vmatprep.mubr.msk.bf16.mxu1 %vm538_vm1, %v2186_v63  ;;  %2087 = vmatpush3.bf16.msra.mxu1 %v2188_v37 }
 0x1cc   :  { %2088 = vmatprep.subr.bf16.mxu1 %v2189_v35 }
 0x1cf   :  { %2089 = vmatpush3.bf16.msra.mxu1 %v2189_v35 }
 0x1d2   :  { %2063 = vmatmul.mubr.msk.bf16.gmra.mxu1 %vm538_vm1, %v2187_v42 }
 0x25a   :  { %v2012_v20 = vpop.f32.mrf.mxu1 }
 0x25b   :  { %v699_v47 = vmul.f32 %v2012_v20, %v2542_v48 }
 0x25c   :  { %v585_v26 = vpop.f32.mrf.mxu1 }
 0x25d   :  { %v697_v54 = vmul.f32 %v585_v26, %v2556_v6 }
 0x25e   :  { %v2013_v38 = vpop.f32.mrf.mxu1 }
 0x25f   :  { %v700_v45 = vmul.f32 %v2013_v38, %v2545_v51 }
 0x260   :  { %v588_v46 = vpop.f32.mrf.mxu1 }
 0x261   :  { %v698_v55 = vmul.f32 %v588_v46, %v2549_v61  ;;  %v714_v2 = vpack.c.bf16 %v700_v45, %v699_v47 }
 0x262   :  { %v2016_v0 = vpop.f32.mrf.mxu1 }
 0x263   :  { %v713_v18 = vpack.c.bf16 %v698_v55, %v697_v54  ;;  %v703_v60 = vmul.f32 %v2016_v0, %v2579_v22 }
 0x264   :  { %v601_v3 = vpop.f32.mrf.mxu1 }
 0x265   :  { %2090 = vmatprep.mubr.msk.bf16.mxu1 %vm116_vm0, %v713_v18  ;;  %v701_v53 = vmul.f32 %v601_v3, %v2594_v23 }
 0x266   :  { %v2017_v44 = vpop.f32.mrf.mxu1  ;;  %2091 = vmatmul.mubr.msk.bf16.vlgmr.msra.gmra.mxu1 %vm116_vm0, %v714_v2 }
 0x267   :  { %v704_v19 = vmul.f32 %v2017_v44, %v2582_v11 }
 0x268   :  { %v604_v28 = vpop.f32.mrf.mxu1 }
 0x269   :  { %v702_v4 = vmul.f32 %v604_v28, %v2587_v34  ;;  %v716_v49 = vpack.c.bf16 %v704_v19, %v703_v60  ;;  %v2191_v60 = vld [vmem:[%s3069_s4 + $0x10] sm:$0xff]  }
 0x26a   :  { %v2028_v7 = vpop.f32.mrf.mxu1 }
 0x26b   :  { %v715_v1 = vpack.c.bf16 %v702_v4, %v701_v53  ;;  %v707_v39 = vmul.f32 %v2028_v7, %v2627_v13  ;;  %v2190_v4 = vld [vmem:[%s3069_s4 + $0x18] sm:$0xff]  }
 0x26c   :  { %v666_v10 = vpop.f32.mrf.mxu1  ;;  %2066 = vmatprep.subr.bf16.mxu0 %v2190_v4 }
 0x26d   :  { %2094 = vmatprep.mubr.msk.bf16.mxu1 %vm116_vm0, %v715_v1  ;;  %v705_v17 = vmul.f32 %v666_v10, %v2597_v57  ;;  %2067 = vmatpush3.bf16.msra.mxu0 %v2190_v4 }
 0x26e   :  { %v2029_v12 = vpop.f32.mrf.mxu1  ;;  %2095 = vmatmul.mubr.msk.bf16.gmra.mxu1 %vm116_vm0, %v716_v49  ;;  %2068 = vmatprep.subr.bf16.mxu0 %v2191_v60 }
 0x26f   :  { %v708_v14 = vmul.f32 %v2029_v12, %v2621_v59 }
 0x270   :  { %v669_v16 = vpop.f32.mrf.mxu1 }
 0x271   :  { %v706_v43 = vmul.f32 %v669_v16, %v2600_v52  ;;  %v718_v62 = vpack.c.bf16 %v708_v14, %v707_v39  ;;  %2069 = vmatpush3.bf16.msra.mxu0 %v2191_v60 }
 0x272   :  { %v2032_v50 = vpop.f32.mrf.mxu1 }
 0x273   :  { %v717_v40 = vpack.c.bf16 %v706_v43, %v705_v17  ;;  %v711_v42 = vmul.f32 %v2032_v50, %v2618_v5 }
 0x274   :  { %v682_v27 = vpop.f32.mrf.mxu1 }
 0x275   :  { %2098 = vmatprep.mubr.msk.bf16.mxu1 %vm116_vm0, %v717_v40  ;;  %v709_v25 = vmul.f32 %v682_v27, %v2567_v15 }
 0x276   :  { %v2033_v29 = vpop.f32.mrf.mxu1  ;;  %2099 = vmatmul.mubr.msk.bf16.gmra.mxu1 %vm116_vm0, %v718_v62 }
 0x277   :  { %v712_v63 = vmul.f32 %v2033_v29, %v2606_v30 }
 0x278   :  { %v685_v9 = vpop.f32.mrf.mxu1 }
 0x279   :  { %v710_v31 = vmul.f32 %v685_v9, %v2562_v8  ;;  %v720_v20 = vpack.c.bf16 %v712_v63, %v711_v42 }
 0x27a   :  { %v2044_v37 = vpop.f32.mrf.mxu1 }
 0x27b   :  { %v719_v35 = vpack.c.bf16 %v710_v31, %v709_v25 }
 0x27c   :  { %v800_v26 = vpop.f32.mrf.mxu1 }
 0x27d   :  { %912 = vrot.lane.b32.xlu0 %v800_v26, %s2327_s0  ;;  %2102 = vmatprep.mubr.msk.bf16.mxu1 %vm116_vm0, %v719_v35 }
 0x27e   :  { %v2045_v38 = vpop.f32.mrf.mxu1  ;;  %2103 = vmatmul.mubr.msk.bf16.gmra.mxu1 %vm116_vm0, %v720_v20 }
 0x280   :  { %v803_v45 = vpop.f32.mrf.mxu1 }
 0x281   :  { %916 = vrot.lane.b32.xlu0 %v2044_v37, %s2327_s0  ;;  %914 = vrot.lane.b32.xlu1 %v803_v45, %s2327_s0 }
 0x282   :  { %v2048_v46 = vpop.f32.mrf.mxu1 }
 0x284   :  { %v816_v54 = vpop.f32.mrf.mxu1 }
 0x285   :  { %918 = vrot.lane.b32.xlu1 %v2045_v38, %s2327_s0  ;;  %920 = vrot.lane.b32.xlu0 %v816_v54, %s2327_s0 }
 0x286   :  { %v2049_v55 = vpop.f32.mrf.mxu1 }
 0x288   :  { %v819_v47 = vpop.f32.mrf.mxu1 }
 0x289   :  { %924 = vrot.lane.b32.xlu0 %v2048_v46, %s2327_s0  ;;  %922 = vrot.lane.b32.xlu1 %v819_v47, %s2327_s0 }
 0x28a   :  { %v2060_v0 = vpop.f32.mrf.mxu1 }
 0x28c   :  { %v865_v18 = vpop.f32.mrf.mxu1 }
 0x28d   :  { %926 = vrot.lane.b32.xlu1 %v2049_v55, %s2327_s0  ;;  %928 = vrot.lane.b32.xlu0 %v865_v18, %s2327_s0 }
 0x28e   :  { %v2061_v2 = vpop.f32.mrf.mxu1 }
 0x290   :  { %v868_v3 = vpop.f32.mrf.mxu1 }
 0x291   :  { %932 = vrot.lane.b32.xlu0 %v2060_v0, %s2327_s0  ;;  %930 = vrot.lane.b32.xlu1 %v868_v3, %s2327_s0 }
 0x292   :  { %v2064_v44 = vpop.f32.mrf.mxu1 }
 0x294   :  { %v881_v19 = vpop.f32.mrf.mxu1 }
 0x295   :  { %934 = vrot.lane.b32.xlu1 %v2061_v2, %s2327_s0  ;;  %936 = vrot.lane.b32.xlu0 %v881_v19, %s2327_s0 }
 0x296   :  { %v2065_v28 = vpop.f32.mrf.mxu1 }
 0x298   :  { %v884_v53 = vpop.f32.mrf.mxu1 }
 0x299   :  { %940 = vrot.lane.b32.xlu0 %v2064_v44, %s2327_s0  ;;  %938 = vrot.lane.b32.xlu1 %v884_v53, %s2327_s0  ;;  %v2192_v53 = vld [vmem:[%s3068_s3 + $0x40] sm:$0xff]  }
 0x29a   :  { %2130 = vmatprep.mubr.msk.bf16.mxu1 %vm538_vm1, %v2192_v53 }
 0x29d   :  { %942 = vrot.lane.b32.xlu1 %v2065_v28, %s2327_s0 }
 0x2ef   :  { %v913_v7 = vpop.permute.xlu0 %912 }
 0x2f0   :  { %v960_v10 = vmul.f32 %v913_v7, %v2556_v6 }
 0x2f3   :  { %v917_v1 = vpop.permute.xlu0 %916  ;;  %v915_v49 = vpop.permute.xlu1 %914 }
 0x2f4   :  { %v961_v12 = vmul.f32 %v915_v49, %v2549_v61  ;;  %v962_v43 = vmul.f32 %v917_v1, %v2542_v48 }
 0x2f6   :  { %v976_v14 = vpack.c.bf16 %v961_v12, %v960_v10 }
 0x2f7   :  { %v919_v16 = vpop.permute.xlu1 %918  ;;  %v921_v17 = vpop.permute.xlu0 %920 }
 0x2f8   :  { %v963_v39 = vmul.f32 %v919_v16, %v2545_v51  ;;  %996 = vrot.lane.b32.xlu0 %v976_v14, %s2328_s20  ;;  %v964_v27 = vmul.f32 %v921_v17, %v2594_v23  ;;  %v2193_v16 = vld [vmem:[%s3068_s3 + $0x48] sm:$0xff]   ;;  %v2194_v17 = vld [vmem:[%s3068_s3 + $0x50] sm:$0xff]  }
 0x2fa   :  { %v977_v50 = vpack.c.bf16 %v963_v39, %v962_v43 }
 0x2fb   :  { %v925_v40 = vpop.permute.xlu0 %924  ;;  %v923_v62 = vpop.permute.xlu1 %922 }
 0x2fc   :  { %v965_v29 = vmul.f32 %v923_v62, %v2587_v34  ;;  %998 = vrot.lane.b32.xlu1 %v977_v50, %s2328_s20  ;;  %v966_v31 = vmul.f32 %v925_v40, %v2579_v22  ;;  %v2195_v50 = vld [vmem:[%s3068_s3 + $0x58] sm:$0xff]   ;;  %s2329_s3 = smov 64  }
 0x2fe   :  { %v978_v63 = vpack.c.bf16 %v965_v29, %v964_v27 }
 0x2ff   :  { %v927_v9 = vpop.permute.xlu1 %926  ;;  %v929_v25 = vpop.permute.xlu0 %928 }
 0x300   :  { %v967_v42 = vmul.f32 %v927_v9, %v2582_v11  ;;  %1000 = vrot.lane.b32.xlu0 %v978_v63, %s2328_s20  ;;  %v968_v26 = vmul.f32 %v929_v25, %v2597_v57 }
 0x302   :  { %v979_v37 = vpack.c.bf16 %v967_v42, %v966_v31 }
 0x303   :  { %v933_v35 = vpop.permute.xlu0 %932  ;;  %v931_v20 = vpop.permute.xlu1 %930 }
 0x304   :  { %v969_v38 = vmul.f32 %v931_v20, %v2600_v52  ;;  %1002 = vrot.lane.b32.xlu1 %v979_v37, %s2328_s20  ;;  %v970_v55 = vmul.f32 %v933_v35, %v2627_v13 }
 0x306   :  { %v980_v45 = vpack.c.bf16 %v969_v38, %v968_v26 }
 0x307   :  { %v935_v46 = vpop.permute.xlu1 %934  ;;  %v937_v54 = vpop.permute.xlu0 %936 }
 0x308   :  { %v971_v47 = vmul.f32 %v935_v46, %v2621_v59  ;;  %1004 = vrot.lane.b32.xlu0 %v980_v45, %s2328_s20  ;;  %v972_v2 = vmul.f32 %v937_v54, %v2567_v15 }
 0x30a   :  { %v981_v0 = vpack.c.bf16 %v971_v47, %v970_v55 }
 0x30b   :  { %v939_v18 = vpop.permute.xlu1 %938  ;;  %v941_v44 = vpop.permute.xlu0 %940 }
 0x30c   :  { %v973_v3 = vmul.f32 %v939_v18, %v2562_v8  ;;  %1317 = vrot.lane.b32.xlu0 %v2591_v21, %s2328_s20  ;;  %1006 = vrot.lane.b32.xlu1 %v981_v0, %s2328_s20  ;;  %v974_v4 = vmul.f32 %v941_v44, %v2618_v5 }
 0x30e   :  { %v982_v19 = vpack.c.bf16 %v973_v3, %v972_v2 }
 0x30f   :  { %v943_v28 = vpop.permute.xlu1 %942 }
 0x310   :  { %v975_v60 = vmul.f32 %v943_v28, %v2606_v30  ;;  %1315 = vrot.lane.b32.xlu1 %v2576_v58, %s2328_s20  ;;  %1008 = vrot.lane.b32.xlu0 %v982_v19, %s2328_s20 }
 0x312   :  { %v983_v21 = vpack.c.bf16 %v975_v60, %v974_v4 }
 0x314   :  { %1313 = vrot.lane.b32.xlu0 %v2559_v32, %s2328_s20  ;;  %1010 = vrot.lane.b32.xlu1 %v983_v21, %s2328_s20 }
 0x318   :  { %1410 = vrot.lane.b32.xlu0 %v2682_v24, %s2328_s20  ;;  %1311 = vrot.lane.b32.xlu1 %v2533_v36, %s2328_s20 }
 0x31c   :  { %1406 = vrot.lane.b32.xlu0 %v2698_v56, %s2328_s20  ;;  %1408 = vrot.lane.b32.xlu1 %v2535_v41, %s2328_s20 }
 0x320   :  { %1404 = vrot.lane.b32.xlu1 %v2615_v33, %s2328_s20 }
 0x326   :  { %v2833_v62 = vpop.f32.mrf.mxu1 }
 0x328   :  { %v2835_v27 = vpop.f32.mrf.mxu1 }
 0x32a   :  { %v2837_v29 = vpop.f32.mrf.mxu1 }
 0x32c   :  { %v2839_v63 = vpop.f32.mrf.mxu1 }
 0x32e   :  { %v2841_v9 = vpop.f32.mrf.mxu1 }
 0x330   :  { %v2843_v25 = vpop.f32.mrf.mxu1 }
 0x332   :  { %v2845_v31 = vpop.f32.mrf.mxu1 }
 0x334   :  { %v2847_v42 = vpop.f32.mrf.mxu1 }
 0x336   :  { %v2851_v35 = vpop.f32.mrf.mxu1 }
 0x338   :  { %v2857_v38 = vpop.f32.mrf.mxu1 }
 0x33a   :  { %v2863_v54 = vpop.f32.mrf.mxu1 }
 0x33c   :  { %v2869_v0 = vpop.f32.mrf.mxu1 }
 0x33e   :  { %v2875_v3 = vpop.f32.mrf.mxu1 }
 0x340   :  { %v2881_v28 = vpop.f32.mrf.mxu1 }
 0x342   :  { %v2887_v60 = vpop.f32.mrf.mxu1 }
 0x36a   :  { %v997_v58 = vpop.permute.xlu0 %996 }
 0x36b   :  { %2070 = vmatprep.mubr.msk.bf16.mxu0 %vm116_vm0, %v997_v58 }
 0x36e   :  { %v999_v32 = vpop.permute.xlu1 %998 }
 0x36f   :  { %2071 = vmatmul.mubr.msk.bf16.vlgmr.msra.gmra.mxu0 %vm116_vm0, %v999_v32  ;;  %v1266_v32 = vpop.f32.mrf.mxu1 }
 0x372   :  { %v1001_v7 = vpop.permute.xlu0 %1000 }
 0x373   :  { %2074 = vmatprep.mubr.msk.bf16.mxu0 %vm116_vm0, %v1001_v7 }
 0x376   :  { %v1003_v24 = vpop.permute.xlu1 %1002 }
 0x377   :  { %2075 = vmatmul.mubr.msk.bf16.gmra.mxu0 %vm116_vm0, %v1003_v24 }
 0x37a   :  { %v1005_v36 = vpop.permute.xlu0 %1004 }
 0x37b   :  { %2078 = vmatprep.mubr.msk.bf16.mxu0 %vm116_vm0, %v1005_v36 }
 0x37e   :  { %v1318_v56 = vpop.permute.xlu0 %1317  ;;  %v1007_v41 = vpop.permute.xlu1 %1006 }
 0x37f   :  { %2079 = vmatmul.mubr.msk.bf16.gmra.mxu0 %vm116_vm0, %v1007_v41  ;;  %2106 = vmatprep.subr.bf16.mxu0 %v1318_v56 }
 0x380   :  { %2107 = vmatpush3.bf16.msra.mxu0 %v1318_v56 }
 0x382   :  { %v1009_v33 = vpop.permute.xlu0 %1008  ;;  %v1316_v1 = vpop.permute.xlu1 %1315 }
 0x383   :  { %2082 = vmatprep.mubr.msk.bf16.mxu0 %vm116_vm0, %v1009_v33  ;;  %2108 = vmatprep.subr.bf16.mxu0 %v1316_v1 }
 0x384   :  { %2109 = vmatpush3.bf16.msra.mxu0 %v1316_v1 }
 0x386   :  { %v1314_v49 = vpop.permute.xlu0 %1313  ;;  %v1011_v10 = vpop.permute.xlu1 %1010 }
 0x387   :  { %2083 = vmatmul.mubr.msk.bf16.gmra.mxu0 %vm116_vm0, %v1011_v10  ;;  %2110 = vmatprep.subr.bf16.mxu0 %v1314_v49 }
 0x388   :  { %2111 = vmatpush3.bf16.msra.mxu0 %v1314_v49  ;;  %2114 = vmatprep.mubr.msk.bf16.mxu0 %vm538_vm1, %v2192_v53 }
 0x38a   :  { %v1411_v12 = vpop.permute.xlu0 %1410  ;;  %v1312_v14 = vpop.permute.xlu1 %1311 }
 0x38b   :  { %2112 = vmatprep.subr.bf16.mxu0 %v1312_v14  ;;  %2122 = vmatprep.subr.bf16.mxu1 %v1411_v12 }
 0x38c   :  { %2113 = vmatpush3.bf16.msra.mxu0 %v1312_v14  ;;  %2123 = vmatpush3.bf16.msra.mxu1 %v1411_v12 }
 0x38e   :  { %v1409_v43 = vpop.permute.xlu1 %1408  ;;  %v1407_v39 = vpop.permute.xlu0 %1406 }
 0x38f   :  { %2115 = vmatmul.mubr.msk.bf16.vlgmr.msra.gmra.mxu0 %vm538_vm1, %v2193_v16  ;;  %2124 = vmatprep.subr.bf16.mxu1 %v1409_v43 }
 0x390   :  { %2125 = vmatpush3.bf16.msra.mxu1 %v1409_v43  ;;  %2118 = vmatprep.mubr.msk.bf16.mxu0 %vm538_vm1, %v2194_v17 }
 0x391   :  { %2126 = vmatprep.subr.bf16.mxu1 %v1407_v39 }
 0x392   :  { %v1405_v40 = vpop.permute.xlu1 %1404 }
 0x394   :  { %2127 = vmatpush3.bf16.msra.mxu1 %v1407_v39 }
 0x395   :  { %2128 = vmatprep.subr.bf16.mxu1 %v1405_v40 }
 0x397   :  { %2119 = vmatmul.mubr.msk.bf16.gmra.mxu0 %vm538_vm1, %v2195_v50 }
 0x398   :  { %2129 = vmatpush3.bf16.msra.mxu1 %v1405_v40 }
 0x39b   :  { %2131 = vmatmul.mubr.msk.bf16.vlgmr.msra.gmra.mxu1 %vm538_vm1, %v2193_v16 }
 0x39c   :  { %2134 = vmatprep.mubr.msk.bf16.mxu1 %vm538_vm1, %v2194_v17 }
 0x3a3   :  { %2135 = vmatmul.mubr.msk.bf16.gmra.mxu1 %vm538_vm1, %v2195_v50 }
 0x42f   :  { %v2849_v37 = vpop.f32.mrf.mxu0 }
 0x431   :  { %v2853_v20 = vpop.f32.mrf.mxu0 }
 0x433   :  { %v2855_v26 = vpop.f32.mrf.mxu0 }
 0x435   :  { %v2859_v45 = vpop.f32.mrf.mxu0 }
 0x437   :  { %v2861_v46 = vpop.f32.mrf.mxu0 }
 0x439   :  { %v2865_v55 = vpop.f32.mrf.mxu0 }
 0x43b   :  { %v2867_v47 = vpop.f32.mrf.mxu0 }
 0x43d   :  { %v2871_v18 = vpop.f32.mrf.mxu0 }
 0x43f   :  { %v2873_v2 = vpop.f32.mrf.mxu0 }
 0x441   :  { %v2877_v44 = vpop.f32.mrf.mxu0 }
 0x443   :  { %v2879_v19 = vpop.f32.mrf.mxu0 }
 0x445   :  { %v2883_v53 = vpop.f32.mrf.mxu0 }
 0x447   :  { %v2885_v4 = vpop.f32.mrf.mxu0 }
 0x449   :  { %v2889_v21 = vpop.f32.mrf.mxu0 }
 0x44b   :  { %v2891_v58 = vpop.f32.mrf.mxu0 }
 0x44d   :  { %v1133_v7 = vpop.f32.mrf.mxu0 }
 0x44e   :  { %v2893_v24 = vadd.f32 %v1266_v32, %v1133_v7  ;;  %v2196_v32 = vld [vmem:[%s3069_s4 + $0x28] sm:$0xff]  }
 0x44f   :  { %v2116_v36 = vpop.f32.mrf.mxu0  ;;  %2138 = vmatprep.subr.bf16.mxu0 %v2196_v32 }
 0x450   :  { %2139 = vmatpush3.bf16.msra.mxu0 %v2196_v32 }
 0x451   :  { %v1369_v56 = vpop.f32.mrf.mxu0 }
 0x452   :  { %1497 = vrot.lane.b32.xlu0 %v1369_v56, %s2329_s3 }
 0x453   :  { %v2117_v41 = vpop.f32.mrf.mxu0 }
 0x455   :  { %v1372_v33 = vpop.f32.mrf.mxu0 }
 0x456   :  { %1501 = vrot.lane.b32.xlu0 %v2116_v36, %s2329_s3  ;;  %1499 = vrot.lane.b32.xlu1 %v1372_v33, %s2329_s3  ;;  %v2197_v36 = vld [vmem:[%s3069_s4 + $0x20] sm:$0xff]  }
 0x457   :  { %v2120_v1 = vpop.f32.mrf.mxu0  ;;  %2140 = vmatprep.subr.bf16.mxu0 %v2197_v36 }
 0x458   :  { %2141 = vmatpush3.bf16.msra.mxu0 %v2197_v36 }
 0x459   :  { %v1385_v49 = vpop.f32.mrf.mxu0 }
 0x45a   :  { %1503 = vrot.lane.b32.xlu1 %v2117_v41, %s2329_s3  ;;  %1505 = vrot.lane.b32.xlu0 %v1385_v49, %s2329_s3 }
 0x45b   :  { %v2121_v10 = vpop.f32.mrf.mxu0  ;;  %v2132_v12 = vpop.f32.mrf.mxu1 }
 0x45d   :  { %v1388_v14 = vpop.f32.mrf.mxu0  ;;  %v1450_v16 = vpop.f32.mrf.mxu1 }
 0x45e   :  { %1509 = vrot.lane.b32.xlu0 %v2120_v1, %s2329_s3  ;;  %1507 = vrot.lane.b32.xlu1 %v1388_v14, %s2329_s3 }
 0x45f   :  { %v2133_v17 = vpop.f32.mrf.mxu1 }
 0x461   :  { %v1453_v43 = vpop.f32.mrf.mxu1 }
 0x462   :  { %1511 = vrot.lane.b32.xlu1 %v2121_v10, %s2329_s3  ;;  %1513 = vrot.lane.b32.xlu0 %v1450_v16, %s2329_s3 }
 0x463   :  { %v2136_v39 = vpop.f32.mrf.mxu1 }
 0x465   :  { %v1466_v50 = vpop.f32.mrf.mxu1 }
 0x466   :  { %1517 = vrot.lane.b32.xlu0 %v2132_v12, %s2329_s3  ;;  %1515 = vrot.lane.b32.xlu1 %v1453_v43, %s2329_s3 }
 0x467   :  { %v2137_v40 = vpop.f32.mrf.mxu1 }
 0x469   :  { %v1469_v7 = vpop.f32.mrf.mxu1 }
 0x46a   :  { %1519 = vrot.lane.b32.xlu1 %v2133_v17, %s2329_s3  ;;  %1521 = vrot.lane.b32.xlu0 %v1466_v50, %s2329_s3 }
 0x46e   :  { %1525 = vrot.lane.b32.xlu0 %v2136_v39, %s2329_s3  ;;  %1523 = vrot.lane.b32.xlu1 %v1469_v7, %s2329_s3 }
 0x472   :  { %1527 = vrot.lane.b32.xlu1 %v2137_v40, %s2329_s3 }
 0x4c4   :  { %v1498_v56 = vpop.permute.xlu0 %1497 }
 0x4c5   :  { %v1545_v1 = vmul.f32 %v1498_v56, %v2556_v6 }
 0x4c8   :  { %v1502_v41 = vpop.permute.xlu0 %1501  ;;  %v1500_v33 = vpop.permute.xlu1 %1499 }
 0x4c9   :  { %v1546_v49 = vmul.f32 %v1500_v33, %v2549_v61  ;;  %v1547_v16 = vmul.f32 %v1502_v41, %v2542_v48 }
 0x4cb   :  { %v1561_v10 = vpack.c.bf16 %v1546_v49, %v1545_v1 }
 0x4cc   :  { %v1506_v12 = vpop.permute.xlu0 %1505  ;;  %v1504_v14 = vpop.permute.xlu1 %1503 }
 0x4cd   :  { %v1548_v17 = vmul.f32 %v1504_v14, %v2545_v51  ;;  %1581 = vrot.lane.b32.xlu0 %v1561_v10, %s2329_s3  ;;  %v1549_v40 = vmul.f32 %v1506_v12, %v2594_v23 }
 0x4cf   :  { %v1562_v43 = vpack.c.bf16 %v1548_v17, %v1547_v16 }
 0x4d0   :  { %v1510_v39 = vpop.permute.xlu0 %1509  ;;  %v1508_v50 = vpop.permute.xlu1 %1507 }
 0x4d1   :  { %v1550_v32 = vmul.f32 %v1508_v50, %v2587_v34  ;;  %1583 = vrot.lane.b32.xlu1 %v1562_v43, %s2329_s3  ;;  %v1551_v36 = vmul.f32 %v1510_v39, %v2579_v22 }
 0x4d3   :  { %v1563_v6 = vpack.c.bf16 %v1550_v32, %v1549_v40 }
 0x4d4   :  { %v1512_v61 = vpop.permute.xlu1 %1511  ;;  %v1514_v7 = vpop.permute.xlu0 %1513 }
 0x4d5   :  { %v1552_v48 = vmul.f32 %v1512_v61, %v2582_v11  ;;  %1585 = vrot.lane.b32.xlu0 %v1563_v6, %s2329_s3  ;;  %v1553_v33 = vmul.f32 %v1514_v7, %v2597_v57  ;;  %v1224_v6 = vadd.f32 %v2833_v62, %v2849_v37  ;;  %v2954_v7 = vld [vmem:[%s3070_s5] ss:$0 sm:$0xff]  ;;  %v1219_v62 = vadd.f32 %v2839_v63, %v2859_v45 }
 0x4d6   :  { %v1232_v45 = vadd.f32 %v2843_v25, %v2865_v55 }
 0x4d7   :  { %v1564_v51 = vpack.c.bf16 %v1552_v48, %v1551_v36  ;;  %v1216_v36 = vadd.f32 %v2835_v27, %v2853_v20 }
 0x4d8   :  { %v1518_v56 = vpop.permute.xlu0 %1517  ;;  %v1516_v41 = vpop.permute.xlu1 %1515 }
 0x4d9   :  { %v1554_v23 = vmul.f32 %v1516_v41, %v2600_v52  ;;  %1587 = vrot.lane.b32.xlu1 %v1564_v51, %s2329_s3  ;;  %v1555_v10 = vmul.f32 %v1518_v56, %v2627_v13  ;;  %v1227_v56 = vadd.f32 %v2837_v29, %v2855_v26 }
 0x4db   :  { %v1565_v34 = vpack.c.bf16 %v1554_v23, %v1553_v33 }
 0x4dc   :  { %v1520_v1 = vpop.permute.xlu1 %1519  ;;  %v1522_v49 = vpop.permute.xlu0 %1521 }
 0x4dd   :  { %v1556_v22 = vmul.f32 %v1520_v1, %v2621_v59  ;;  %1589 = vrot.lane.b32.xlu0 %v1565_v34, %s2329_s3  ;;  %v1557_v14 = vmul.f32 %v1522_v49, %v2567_v15  ;;  %v1240_v34 = vadd.f32 %v2841_v9, %v2861_v46  ;;  %v1243_v49 = vadd.f32 %v2845_v31, %v2867_v47 }
 0x4df   :  { %v1566_v11 = vpack.c.bf16 %v1556_v22, %v1555_v10  ;;  %v1235_v22 = vadd.f32 %v2847_v42, %v2871_v18 }
 0x4e0   :  { %v1524_v12 = vpop.permute.xlu1 %1523  ;;  %v1526_v57 = vpop.permute.xlu0 %1525 }
 0x4e1   :  { %v1558_v16 = vmul.f32 %v1524_v12, %v2562_v8  ;;  %1591 = vrot.lane.b32.xlu1 %v1566_v11, %s2329_s3  ;;  %v1559_v43 = vmul.f32 %v1526_v57, %v2618_v5  ;;  %v1256_v12 = vadd.f32 %v2851_v35, %v2873_v2 }
 0x4e3   :  { %v1567_v52 = vpack.c.bf16 %v1558_v16, %v1557_v14  ;;  %v1248_v16 = vadd.f32 %v2857_v38, %v2877_v44 }
 0x4e4   :  { %v1528_v17 = vpop.permute.xlu1 %1527 }
 0x4e5   :  { %v1560_v39 = vmul.f32 %v1528_v17, %v2606_v30  ;;  %1593 = vrot.lane.b32.xlu0 %v1567_v52, %s2329_s3  ;;  %v1259_v52 = vadd.f32 %v2863_v54, %v2879_v19 }
 0x4e7   :  { %v1568_v59 = vpack.c.bf16 %v1560_v39, %v1559_v43  ;;  %v1251_v43 = vadd.f32 %v2869_v0, %v2883_v53 }
 0x4e9   :  { %1595 = vrot.lane.b32.xlu1 %v1568_v59, %s2329_s3  ;;  %v1272_v59 = vadd.f32 %v2875_v3, %v2885_v4 }
 0x53f   :  { %v1582_v13 = vpop.permute.xlu0 %1581 }
 0x540   :  { %2142 = vmatprep.mubr.msk.bf16.mxu0 %vm116_vm0, %v1582_v13 }
 0x543   :  { %v1584_v15 = vpop.permute.xlu1 %1583 }
 0x544   :  { %2143 = vmatmul.mubr.msk.bf16.vlgmr.msra.gmra.mxu0 %vm116_vm0, %v1584_v15  ;;  %v1264_v15 = vadd.f32 %v2881_v28, %v2889_v21 }
 0x547   :  { %v1586_v8 = vpop.permute.xlu0 %1585 }
 0x548   :  { %2146 = vmatprep.mubr.msk.bf16.mxu0 %vm116_vm0, %v1586_v8 }
 0x54b   :  { %v1588_v50 = vpop.permute.xlu1 %1587 }
 0x54c   :  { %2147 = vmatmul.mubr.msk.bf16.gmra.mxu0 %vm116_vm0, %v1588_v50  ;;  %v1275_v50 = vadd.f32 %v2887_v60, %v2891_v58 }
 0x54f   :  { %v1590_v5 = vpop.permute.xlu0 %1589 }
 0x550   :  { %2150 = vmatprep.mubr.msk.bf16.mxu0 %vm116_vm0, %v1590_v5 }
 0x553   :  { %v1592_v30 = vpop.permute.xlu1 %1591 }
 0x554   :  { %2151 = vmatmul.mubr.msk.bf16.gmra.mxu0 %vm116_vm0, %v1592_v30 }
 0x557   :  { %v1594_v40 = vpop.permute.xlu0 %1593 }
 0x558   :  { %2154 = vmatprep.mubr.msk.bf16.mxu0 %vm116_vm0, %v1594_v40 }
 0x55b   :  { %v1596_v32 = vpop.permute.xlu1 %1595 }
 0x55c   :  { %2155 = vmatmul.mubr.msk.bf16.gmra.mxu0 %vm116_vm0, %v1596_v32 }
 0x604   :  { %v2144_v61 = vpop.f32.mrf.mxu0 }
 0x605   :  { %v1732_v48 = vadd.f32 %v2144_v61, %v1224_v6 }
 0x606   :  { %v1667_v51 = vpop.f32.mrf.mxu0 }
 0x607   :  { %v1755_v41 = vadd.f32 %v2954_v7, %v1732_v48  ;;  %v1730_v33 = vadd.f32 %v1667_v51, %v1216_v36 }
 0x608   :  { %v2145_v23 = vpop.f32.mrf.mxu0 }
 0x609   :  { %1771 = vst.msk [vmem:[%s3071_s6 + $0x10] sm:$0xff] %vm116_vm0, %v1755_v41  ;;  %v1753_v37 = vadd.f32 %v2954_v7, %v1730_v33  ;;  %v1733_v27 = vadd.f32 %v2145_v23, %v1227_v56 }
 0x60a   :  { %v1670_v20 = vpop.f32.mrf.mxu0 }
 0x60b   :  { %1769 = vst.msk [vmem:[%s3071_s6] sm:$0xff] %vm116_vm0, %v1753_v37  ;;  %v1756_v29 = vadd.f32 %v2954_v7, %v1733_v27  ;;  %v1731_v63 = vadd.f32 %v1670_v20, %v1219_v62 }
 0x60c   :  { %v2148_v26 = vpop.f32.mrf.mxu0 }
 0x60d   :  { %1772 = vst.msk [vmem:[%s3071_s6 + $0x18] sm:$0xff] %vm116_vm0, %v1756_v29  ;;  %v1754_v1 = vadd.f32 %v2954_v7, %v1731_v63  ;;  %v1736_v9 = vadd.f32 %v2148_v26, %v1240_v34 }
 0x60e   :  { %v1683_v46 = vpop.f32.mrf.mxu0 }
 0x60f   :  { %1770 = vst.msk [vmem:[%s3071_s6 + $0x8] sm:$0xff] %vm116_vm0, %v1754_v1  ;;  %v1759_v10 = vadd.f32 %v2954_v7, %v1736_v9  ;;  %v1734_v25 = vadd.f32 %v1683_v46, %v1232_v45 }
 0x610   :  { %v2149_v55 = vpop.f32.mrf.mxu0 }
 0x611   :  { %1775 = vst.msk [vmem:[%s3071_s6 + $0x30] sm:$0xff] %vm116_vm0, %v1759_v10  ;;  %v1757_v11 = vadd.f32 %v2954_v7, %v1734_v25  ;;  %v1737_v31 = vadd.f32 %v2149_v55, %v1243_v49 }
 0x612   :  { %v1686_v47 = vpop.f32.mrf.mxu0 }
 0x613   :  { %1773 = vst.msk [vmem:[%s3071_s6 + $0x20] sm:$0xff] %vm116_vm0, %v1757_v11  ;;  %v1760_v14 = vadd.f32 %v2954_v7, %v1737_v31  ;;  %v1735_v42 = vadd.f32 %v1686_v47, %v1235_v22 }
 0x614   :  { %v2152_v18 = vpop.f32.mrf.mxu0 }
 0x615   :  { %1776 = vst.msk [vmem:[%s3071_s6 + $0x38] sm:$0xff] %vm116_vm0, %v1760_v14  ;;  %v1758_v57 = vadd.f32 %v2954_v7, %v1735_v42  ;;  %v1740_v35 = vadd.f32 %v2152_v18, %v1256_v12 }
 0x616   :  { %v1699_v2 = vpop.f32.mrf.mxu0 }
 0x617   :  { %1774 = vst.msk [vmem:[%s3071_s6 + $0x28] sm:$0xff] %vm116_vm0, %v1758_v57  ;;  %v1763_v17 = vadd.f32 %v2954_v7, %v1740_v35  ;;  %v1738_v38 = vadd.f32 %v1699_v2, %v1248_v16 }
 0x618   :  { %v2153_v44 = vpop.f32.mrf.mxu0 }
 0x619   :  { %1779 = vst.msk [vmem:[%s3071_s6 + $0x50] sm:$0xff] %vm116_vm0, %v1763_v17  ;;  %v1761_v39 = vadd.f32 %v2954_v7, %v1738_v38  ;;  %v1741_v54 = vadd.f32 %v2153_v44, %v1259_v52 }
 0x61a   :  { %v1702_v19 = vpop.f32.mrf.mxu0 }
 0x61b   :  { %1777 = vst.msk [vmem:[%s3071_s6 + $0x40] sm:$0xff] %vm116_vm0, %v1761_v39  ;;  %v1764_v13 = vadd.f32 %v2954_v7, %v1741_v54  ;;  %v1739_v0 = vadd.f32 %v1702_v19, %v1251_v43 }
 0x61c   :  { %v2156_v53 = vpop.f32.mrf.mxu0 }
 0x61d   :  { %1780 = vst.msk [vmem:[%s3071_s6 + $0x58] sm:$0xff] %vm116_vm0, %v1764_v13  ;;  %v1762_v8 = vadd.f32 %v2954_v7, %v1739_v0  ;;  %v1744_v3 = vadd.f32 %v2156_v53, %v1272_v59 }
 0x61e   :  { %v1715_v4 = vpop.f32.mrf.mxu0 }
 0x61f   :  { %1778 = vst.msk [vmem:[%s3071_s6 + $0x48] sm:$0xff] %vm116_vm0, %v1762_v8  ;;  %v1767_v5 = vadd.f32 %v2954_v7, %v1744_v3  ;;  %v1742_v28 = vadd.f32 %v1715_v4, %v1264_v15 }
 0x620   :  { %v2157_v21 = vpop.f32.mrf.mxu0 }
 0x621   :  { %1783 = vst.msk [vmem:[%s3071_s6 + $0x70] sm:$0xff] %vm116_vm0, %v1767_v5  ;;  %v1765_v30 = vadd.f32 %v2954_v7, %v1742_v28  ;;  %v1745_v40 = vadd.f32 %v2157_v21, %v1275_v50 }
 0x622   :  { %v1718_v32 = vpop.f32.mrf.mxu0 }
 0x623   :  { %1781 = vst.msk [vmem:[%s3071_s6 + $0x60] sm:$0xff] %vm116_vm0, %v1765_v30  ;;  %v1768_v60 = vadd.f32 %v2954_v7, %v1745_v40  ;;  %v1743_v58 = vadd.f32 %v1718_v32, %v2893_v24 }
 0x625   :  { %1784 = vst.msk [vmem:[%s3071_s6 + $0x78] sm:$0xff] %vm116_vm0, %v1768_v60  ;;  %v1766_v6 = vadd.f32 %v2954_v7, %v1743_v58 }
 0x627   :  { %1782 = vst.msk [vmem:[%s3071_s6 + $0x68] sm:$0xff] %vm116_vm0, %v1766_v6 }

</bundles_post_ra>
